<compile_context>
chip_gen: v7x
topology: tpu7x:2x2x1
jax: 0.10.0
libtpu: 0.0.40
codegen_flags: <defaults>
</compile_context>

<pallas_src>
import jax
import jax.numpy as jnp
from jax.experimental import pallas as pl
from jax.experimental.pallas import tpu as pltpu


def _sigmoid_kernel(k_ref, x_ref, o_ref):
    # k_ref: (1,) f32 scalar in SMEM; x_ref/o_ref: (block_rows, 128) VMEM tiles.
    k = k_ref[0]
    xf = x_ref[...].astype(jnp.float32) * k
    # exp runs on the EUP; the divide is VALU work that is fully hidden behind
    # the HBM stream at these tile sizes, and stays exact for the 1e-6 check.
    o_ref[...] = (1.0 / (1.0 + jnp.exp(-xf))).astype(o_ref.dtype)


def sigmoid_k(x, k, *, block_rows=4096):
    """Apply y = sigmoid(k * x) elementwise via a Pallas TPU kernel."""
    orig_shape = x.shape
    orig_dtype = x.dtype

    LANES = 128
    SUBLANES = 8
    chunk = LANES * SUBLANES  # 1024: keeps rows a multiple of 8 (sublane tile)

    n = x.size
    n_pad = pl.cdiv(n, chunk) * chunk
    x_flat = x.reshape(-1)
    padded = n_pad != n
    if padded:
        # Rare ragged-tail case only: pad just to the next 1024 elements and let
        # the grid's last (partial) block be masked by Pallas.
        x_flat = jnp.pad(x_flat, (0, n_pad - n))

    rows = n_pad // LANES
    x2d = x_flat.reshape(rows, LANES)

    # Tile rows: <= block_rows (~2 MiB f32 at 4096x128), a multiple of 16 (so
    # bf16 sublane packing also stays aligned), and >=2 grid steps when there is
    # enough work so both v7x TensorCores get a share.
    br = min(block_rows, rows)
    if rows > 32 and pl.cdiv(rows, br) < 2:
        br = pl.cdiv(pl.cdiv(rows, 2), 16) * 16
    grid = (pl.cdiv(rows, br),)

    k_arr = jnp.asarray([k], dtype=jnp.float32)

    out2d = pl.pallas_call(
        _sigmoid_kernel,
        out_shape=jax.ShapeDtypeStruct((rows, LANES), orig_dtype),
        grid_spec=pltpu.PrefetchScalarGridSpec(
            num_scalar_prefetch=1,
            grid=grid,
            in_specs=[pl.BlockSpec((br, LANES), lambda i, k_ref: (i, 0))],
            out_specs=pl.BlockSpec((br, LANES), lambda i, k_ref: (i, 0)),
        ),
        compiler_params=pltpu.CompilerParams(
            dimension_semantics=("parallel",),
        ),
    )(k_arr, x2d)

    out_flat = out2d.reshape(-1)
    if padded:
        out_flat = out_flat[:n]
    return out_flat.reshape(orig_shape)


if __name__ == "__main__":
    k = 3.0  # the module's scalar parameter, set deterministically in-script
    key = jax.random.PRNGKey(0)
    x = jax.random.normal(key, (2, 4, 16, 16), dtype=jnp.float32)  # NCHW

    y = sigmoid_k(x, k)
    y = jax.block_until_ready(y)

    # reference check in plain JAX
    y_ref = jax.nn.sigmoid(k * x)
    assert y.shape == x.shape and y.dtype == x.dtype
    assert jnp.max(jnp.abs(y - y_ref)) < 1e-6

    print("KERNEL_OK")
</pallas_src>

<mosaic_0001>
module attributes {stable_mosaic.version = 11 : i64} {
  func.func @_sigmoid_kernel(%arg0: i32, %arg1: memref<1xf32, #tpu.memory_space<smem>>, %arg2: memref<16x128xf32, #tpu.memory_space<vmem>>, %arg3: memref<16x128xf32, #tpu.memory_space<vmem>>) attributes {dimension_semantics = [#tpu.dimension_semantics<parallel>], iteration_bounds = array<i64: 1>, scalar_prefetch = 1 : i64, scratch_operands = 0 : i64, tpu.core_type = #tpu.core_type<tc>, window_params = [{transform_indices = @transform_0, window_bounds = array<i64: 16, 128>}, {transform_indices = @transform_1, window_bounds = array<i64: 16, 128>}]} {
    %c0 = arith.constant 0 : index
    %0 = memref.load %arg1[%c0] : memref<1xf32, #tpu.memory_space<smem>>
    %c0_0 = arith.constant 0 : index
    %c0_1 = arith.constant 0 : index
    %1 = vector.load %arg2[%c0_0, %c0_1] : memref<16x128xf32, #tpu.memory_space<vmem>>, vector<16x128xf32>
    %2 = vector.broadcast %0 : f32 to vector<16x128xf32>
    %3 = arith.mulf %1, %2 : vector<16x128xf32>
    %cst = arith.constant 0.000000e+00 : f32
    %4 = vector.broadcast %cst : f32 to vector<16x128xf32>
    %5 = arith.subf %4, %3 : vector<16x128xf32>
    %6 = math.exp %5 : vector<16x128xf32>
    %cst_2 = arith.constant 1.000000e+00 : f32
    %7 = vector.broadcast %cst_2 : f32 to vector<16x128xf32>
    %8 = arith.addf %7, %6 : vector<16x128xf32>
    %cst_3 = arith.constant 1.000000e+00 : f32
    %9 = vector.broadcast %cst_3 : f32 to vector<16x128xf32>
    %10 = arith.divf %9, %8 : vector<16x128xf32>
    %c0_4 = arith.constant 0 : index
    %c0_5 = arith.constant 0 : index
    %11 = vector.load %arg3[%c0_4, %c0_5] : memref<16x128xf32, #tpu.memory_space<vmem>>, vector<16x128xf32>
    tpu.vector_store %arg3[%c0_4, %c0_5], %10 {strides = array<i32>} : memref<16x128xf32, #tpu.memory_space<vmem>>, vector<16x128xf32>,
    return
  }
  func.func @transform_0(%arg0: i32, %arg1: memref<1xf32, #tpu.memory_space<smem>>) -> (i32, i32) {
    %c0_i32 = arith.constant 0 : i32
    %c0_i32_0 = arith.constant 0 : i32
    return %arg0, %c0_i32 : i32, i32
  }
  func.func @transform_1(%arg0: i32, %arg1: memref<1xf32, #tpu.memory_space<smem>>) -> (i32, i32) {
    %c0_i32 = arith.constant 0 : i32
    %c0_i32_0 = arith.constant 0 : i32
    return %arg0, %c0_i32 : i32, i32
  }
}

</mosaic_0001>

<bundles_post_ra>
// kernel: tpu_custom_call.1
= control target key start
LH: loop header
LB: loop body
LE: loop exit
PB: predicated region body
PF: predicated region fallthrough
CT: control target
= control target key end

     0   :  { %8 = vsyncpa [#allocation5], 0  ;;  %s174_s0 = inlined_call_operand.<no memory space> [shape: f32[1], index: 0, kind: input, shape index: {}]   ;;  %s175_s1 = inlined_call_operand.hbm [shape: f32[16,128], index: 1, kind: input, shape index: {}]   ;;  %s176_s2 = inlined_call_operand.hbm [shape: f32[16,128], index: 2, kind: output, shape index: {}]  }
   0x1   :  { %9 = vsyncpa [#allocation6], 0  ;;  %s122_s9 = smov [#allocation4]   ;;  %s74_s13 = scalar_lea.hbm %s175_s1, 256 }
   0x2   :  { %s15_s10 = sshll.u32 %s122_s9, 4  ;;  %p75_p0 = scmp.ne.s32.totalorder %s175_s1, %s74_s13  ;;  %s16_s10 = int_to_ptr.vmem [resolvable:$true] %s15_s10 }
   0x3   :  { %p78_p1 = scmp.lt.u32.totalorder %s74_s13, %s175_s1 }
   0x5   :  { %p80_p2 = pnand %p78_p1, %p75_p0 }
   0x7   :  { %83 = shalt.err (!%p80_p2)
}
   0x8   :  { %s84_s18 = scalar_lea.vmem %s16_s10, 256  ;;  %p89_p4 = scmp.lt.s32.totalorder %s16_s10, %s16_s10 }
   0x9   :  { %p85_p3 = scmp.ne.s32.totalorder %s16_s10, %s84_s18  ;;  %p90_p5 = scmp.lt.s32.totalorder %s84_s18, %s84_s18 }
   0xb   :  { %p91_p6 = por %p90_p5, %p89_p4 }
   0xd   :  { %p92_p7 = pnand %p91_p6, %p85_p3 }
   0xf   :  { %95 = shalt.err (!%p92_p7)
}
  0x10   :  { %s123_s19 = smov 128   ;;  %s124_s20 = smov 8  }
  0x11   :  { %21 = dma.hbm_to_vmem [thread:$0]  %s175_s1, 256, %s16_s10, [#allocation5], %s123_s19, %s123_s19, %s124_s20  }
  0x12   :  { %118 = dma.done.wait [#allocation5], 256  }
  0x13   :  { %119 = vsyncadd [#allocation5], 4294967040  ;;  %v28_v0 = vstv %s174_s0  ;;  %v26_v1 = vld [vmem:[#allocation4] sm:$0xff]  ;;  %v27_v2 = vld [vmem:[#allocation4 + $0x8] sm:$0xff]  ;;  %s125_s1 = smov [#allocation7]  }
  0x14   :  { %v29_v3 = vmul.f32 %v28_v0, %v26_v1  ;;  %v30_v4 = vmul.f32 %v28_v0, %v27_v2  ;;  %s50_s25 = sshll.u32 %s125_s1, 4  ;;  %s51_s25 = int_to_ptr.vmem [resolvable:$true] %s50_s25 }
  0x15   :  { %s96_s0 = scalar_lea.vmem %s51_s25, 256  ;;  %p101_p9 = scmp.lt.s32.totalorder %s51_s25, %s51_s25 }
  0x16   :  { %v31_v5 = vsub.f32 0.0, %v29_v3  ;;  %v32_v6 = vsub.f32 0.0, %v30_v4  ;;  %p97_p8 = scmp.ne.s32.totalorder %s51_s25, %s96_s0  ;;  %p102_p10 = scmp.lt.s32.totalorder %s96_s0, %s96_s0 }
  0x18   :  { %v33_v7 = vmul.f32 1.442695, %v31_v5  ;;  %v35_v8 = vmul.f32 1.442695, %v32_v6  ;;  %p103_p11 = por %p102_p10, %p101_p9 }
  0x1a   :  { %66 = vpow2.f32 %v33_v7  ;;  %p104_p12 = pnand %p103_p11, %p97_p8 }
  0x1b   :  { %68 = vpow2.f32 %v35_v8 }
  0x24   :  { %v67_v9 = vpop.eup %66 }
  0x25   :  { %v69_v10 = vpop.eup %68  ;;  %v37_v11 = vadd.f32 1.0, %v67_v9 }
  0x26   :  { %v38_v12 = vadd.f32 1.0, %v69_v10 }
  0x27   :  { %70 = vrcp.f32 %v37_v11 }
  0x28   :  { %72 = vrcp.f32 %v38_v12 }
  0x31   :  { %v71_v13 = vpop.eup %70 }
  0x32   :  { %v73_v14 = vpop.eup %72  ;;  %43 = vst [vmem:[#allocation7] sm:$0xff] %v71_v13 }
  0x33   :  { %44 = vst [vmem:[#allocation7 + $0x8] sm:$0xff] %v73_v14 }
  0x34   :  { %107 = shalt.err (!%p104_p12)
}
  0x35   :  { %s108_s28 = scalar_lea.hbm %s176_s2, 256 }
  0x36   :  { %p109_p13 = scmp.ne.s32.totalorder %s176_s2, %s108_s28  ;;  %p112_p0 = scmp.lt.u32.totalorder %s108_s28, %s176_s2 }
  0x38   :  { %p114_p1 = pnand %p112_p0, %p109_p13 }
  0x3a   :  { %117 = shalt.err (!%p114_p1)
}
  0x3b   :  { %56 = dma.vmem_to_hbm [thread:$0]  %s51_s25, 256, %s176_s2, [#allocation6], %s123_s19, %s123_s19, %s124_s20  }
  0x3c   :  { %120 = dma.done.wait [#allocation6], 256  }
  0x3d   :  { %121 = vsyncadd [#allocation6], 4294967040 }
  0x3e   :  { %60 = vsyncpa [#allocation5], 1 }
  0x3f   :  { %61 = vsyncpa [#allocation6], 1 }

</bundles_post_ra>
